<compile_context>
chip_gen: v7x
topology: tpu7x:2x2x1
jax: 0.10.0
libtpu: 0.0.40
codegen_flags: <defaults>
</compile_context>

<pallas_src>
import functools

import jax
import jax.numpy as jnp
from jax.experimental import pallas as pl
from jax.experimental.pallas import tpu as pltpu

_LANE = 128


def _fused_moe_kernel(x_ref, w_ref, b_ref, out_ref, *, num_experts, d_out_pad):
    # x_ref:   (tile, D_in)                (compute dtype)
    # w_ref:   (D_in, E*Dp + Ep)           fused [expert_0 | ... | expert_{E-1} | gate]
    # b_ref:   (1,    E*Dp + Ep)           f32; padded gate columns biased to -1e30
    # out_ref: (tile, Dp)
    h = jnp.dot(x_ref[...], w_ref[...], preferred_element_type=jnp.float32)
    h = h + b_ref[...]                                   # f32 bias add

    gate_col = num_experts * d_out_pad
    logits = h[:, gate_col:]                             # (tile, Ep); pads are -1e30
    # argmax(softmax(logits)) == argmax(logits)
    sel = jnp.argmax(logits, axis=-1, keepdims=True).astype(jnp.int32)  # (tile, 1)

    # Top-1 combine: unrolled VPU select/add over lane-aligned 128-wide slices.
    out = jnp.where(sel == 0, h[:, :d_out_pad], 0.0)
    for e in range(1, num_experts):
        he = h[:, e * d_out_pad:(e + 1) * d_out_pad]
        out = out + jnp.where(sel == e, he, 0.0)

    out_ref[...] = out.astype(out_ref.dtype)


def moe_forward(x, gate_w, gate_b, expert_w, expert_b, *,
                token_tile=512, compute_dtype=None):
    """x: (B, S, D_in) -> (B, S, D_out).  Hard top-1 MoE (world_size=1)."""
    B, S, D_in = x.shape
    E, D_in2, D_out = expert_w.shape
    assert D_in2 == D_in
    T = B * S

    cdt = compute_dtype if compute_dtype is not None else x.dtype

    # --- fused weight / bias packing (done once in the wrapper) -------------
    d_out_pad = ((D_out + _LANE - 1) // _LANE) * _LANE      # lane-dense output
    e_pad = ((E + _LANE - 1) // _LANE) * _LANE              # gate-logit lane block

    ew = expert_w
    eb = expert_b
    if d_out_pad != D_out:
        ew = jnp.pad(ew, ((0, 0), (0, 0), (0, d_out_pad - D_out)))
        eb = jnp.pad(eb, ((0, 0), (0, d_out_pad - D_out)))
    ew_fused = jnp.transpose(ew, (1, 0, 2)).reshape(D_in, E * d_out_pad)
    gw_pad = jnp.pad(gate_w, ((0, 0), (0, e_pad - E)))
    w_fused = jnp.concatenate([ew_fused, gw_pad], axis=1).astype(cdt)

    eb_fused = eb.reshape(1, E * d_out_pad)
    gb_pad = jnp.concatenate(
        [gate_b, jnp.full((e_pad - E,), -1e30, gate_b.dtype)]).reshape(1, e_pad)
    b_fused = jnp.concatenate([eb_fused, gb_pad], axis=1).astype(jnp.float32)

    n_fused = E * d_out_pad + e_pad

    # --- token tiling --------------------------------------------------------
    x_flat = x.reshape(T, D_in).astype(cdt)
    tile = min(token_tile, ((T + 7) // 8) * 8)      # don't over-pad tiny inputs
    T_pad = ((T + tile - 1) // tile) * tile
    if T_pad != T:
        x_flat = jnp.pad(x_flat, ((0, T_pad - T), (0, 0)))
    grid = (T_pad // tile,)

    # --- explicit VMEM budget (matters on v7x: 64 MiB physical) -------------
    in_sz = jnp.dtype(cdt).itemsize
    out_sz = jnp.dtype(x.dtype).itemsize
    vmem_est = (2 * tile * D_in * in_sz          # double-buffered x tiles
                + 2 * D_in * n_fused * in_sz     # resident fused weight (x2 worst case)
                + 2 * n_fused * 4                # bias
                + 2 * tile * d_out_pad * out_sz  # output tiles
                + tile * n_fused * 4)            # in-kernel f32 GEMM result headroom
    vmem_limit = int(min(max(2 * vmem_est, 32 * 1024 * 1024), 56 * 1024 * 1024))

    kernel = functools.partial(_fused_moe_kernel,
                               num_experts=E, d_out_pad=d_out_pad)

    out_flat = pl.pallas_call(
        kernel,
        out_shape=jax.ShapeDtypeStruct((T_pad, d_out_pad), x.dtype),
        grid_spec=pltpu.PrefetchScalarGridSpec(
            num_scalar_prefetch=0,
            grid=grid,
            in_specs=[
                pl.BlockSpec((tile, D_in), lambda i: (i, 0)),     # x tile
                pl.BlockSpec((D_in, n_fused), lambda i: (0, 0)),  # fused W (resident)
                pl.BlockSpec((1, n_fused), lambda i: (0, 0)),     # fused bias (resident)
            ],
            out_specs=pl.BlockSpec((tile, d_out_pad), lambda i: (i, 0)),
        ),
        compiler_params=pltpu.CompilerParams(
            dimension_semantics=("parallel",),     # token axis shards across TCs
            vmem_limit_bytes=vmem_limit),
    )(x_flat, w_fused, b_fused)

    return out_flat[:T, :D_out].reshape(B, S, D_out)


def moe_reference(x, gate_w, gate_b, expert_w, expert_b):
    """Pure-JAX reference of the single-device forward."""
    B, S, D_in = x.shape
    E, _, D_out = expert_w.shape
    xf = x.reshape(-1, D_in)
    logits = xf @ gate_w + gate_b
    sel = jnp.argmax(jax.nn.softmax(logits, axis=-1), axis=-1)
    all_outs = jnp.einsum("td,edo->teo", xf, expert_w) + expert_b[None, :, :]
    out = jnp.take_along_axis(all_outs, sel[:, None, None], axis=1)[:, 0, :]
    return out.reshape(B, S, D_out)


if __name__ == "__main__":
    # Small shapes consistent with the module's forward.
    batch, seq_len, input_size, output_size = 2, 12, 32, 32
    num_experts, pipeline_depth, world_size, rank = 4, 3, 1, 0
    assert seq_len % pipeline_depth == 0  # required by the reference chunking

    key = jax.random.PRNGKey(0)
    kx, kgw, kgb, kew, keb = jax.random.split(key, 5)

    x = jax.random.normal(kx, (batch, seq_len, input_size), dtype=jnp.float32)

    # Deterministic parameter init (nn.Linear-style scaling).
    gate_w = jax.random.normal(kgw, (input_size, num_experts), jnp.float32) / jnp.sqrt(input_size)
    gate_b = jax.random.normal(kgb, (num_experts,), jnp.float32) * 0.01
    expert_w = jax.random.normal(
        kew, (num_experts, input_size, output_size), jnp.float32) / jnp.sqrt(input_size)
    expert_b = jax.random.normal(keb, (num_experts, output_size), jnp.float32) * 0.01

    # f32 correctness check (exact routing match vs reference).
    run_f32 = jax.jit(functools.partial(moe_forward, token_tile=512))
    out = jax.block_until_ready(run_f32(x, gate_w, gate_b, expert_w, expert_b))

    ref = moe_reference(x, gate_w, gate_b, expert_w, expert_b)
    assert out.shape == (batch, seq_len, output_size)
    assert jnp.allclose(out, ref, atol=1e-4, rtol=1e-4), "mismatch vs reference"

    # bf16 compute path (v6e/v7x MXU throughput + halved weight/activation bytes);
    # routing near ties may legitimately differ from the f32 reference, so only
    # a sanity check here.
    run_bf16 = jax.jit(functools.partial(moe_forward, token_tile=512,
                                         compute_dtype=jnp.bfloat16))
    out_bf16 = jax.block_until_ready(run_bf16(x, gate_w, gate_b, expert_w, expert_b))
    assert out_bf16.shape == (batch, seq_len, output_size)
    assert bool(jnp.all(jnp.isfinite(out_bf16)))

    print("KERNEL_OK")
</pallas_src>

<mosaic_0001>
module attributes {stable_mosaic.version = 11 : i64} {
  func.func @_fused_moe_kernel(%arg0: i32, %arg1: memref<24x32xf32, #tpu.memory_space<vmem>>, %arg2: memref<32x640xf32, #tpu.memory_space<vmem>>, %arg3: memref<1x640xf32, #tpu.memory_space<vmem>>, %arg4: memref<24x128xf32, #tpu.memory_space<vmem>>) attributes {dimension_semantics = [#tpu.dimension_semantics<parallel>], iteration_bounds = array<i64: 1>, scalar_prefetch = 0 : i64, scratch_operands = 0 : i64, tpu.core_type = #tpu.core_type<tc>, window_params = [{transform_indices = @transform_0, window_bounds = array<i64: 24, 32>}, {pipeline_mode = #tpu.pipeline_mode<synchronous>, transform_indices = @transform_1, window_bounds = array<i64: 32, 640>}, {pipeline_mode = #tpu.pipeline_mode<synchronous>, transform_indices = @transform_2, window_bounds = array<i64: 1, 640>}, {transform_indices = @transform_3, window_bounds = array<i64: 24, 128>}]} {
    %c0 = arith.constant 0 : index
    %c0_0 = arith.constant 0 : index
    %0 = vector.load %arg1[%c0, %c0_0] : memref<24x32xf32, #tpu.memory_space<vmem>>, vector<24x32xf32>
    %c0_1 = arith.constant 0 : index
    %c0_2 = arith.constant 0 : index
    %1 = vector.load %arg2[%c0_1, %c0_2] : memref<32x640xf32, #tpu.memory_space<vmem>>, vector<32x640xf32>
    %cst = arith.constant dense<0.000000e+00> : vector<24x640xf32>
    %2 = tpu.matmul %0, %1, %cst {dimension_numbers = #tpu.dot_dimension_numbers<[1], [0], [0], [1], [0, 0, 1, 1], [], []>} : vector<24x32xf32>, vector<32x640xf32>, vector<24x640xf32> -> vector<24x640xf32>
    %c0_3 = arith.constant 0 : index
    %c0_4 = arith.constant 0 : index
    %3 = vector.load %arg3[%c0_3, %c0_4] : memref<1x640xf32, #tpu.memory_space<vmem>>, vector<1x640xf32>
    %4 = vector.broadcast %3 : vector<1x640xf32> to vector<24x640xf32>
    %5 = arith.addf %2, %4 : vector<24x640xf32>
    %6 = vector.extract_strided_slice %5 {offsets = [0, 512], sizes = [24, 128], strides = [1, 1]} : vector<24x640xf32> to vector<24x128xf32>
    %7 = tpu.reduce_index %6 {axis = 1 : i32, kind = #tpu.reduction_kind<arg_max>} : vector<24x128xf32> -> vector<24xi32>
    %8 = vector.shape_cast %7 : vector<24xi32> to vector<24x1xi32>
    %c0_i32 = arith.constant 0 : i32
    %9 = vector.broadcast %c0_i32 : i32 to vector<24x1xi32>
    %10 = arith.cmpi eq, %8, %9 : vector<24x1xi32>
    %11 = vector.extract_strided_slice %5 {offsets = [0, 0], sizes = [24, 128], strides = [1, 1]} : vector<24x640xf32> to vector<24x128xf32>
    %cst_5 = arith.constant 0.000000e+00 : f32
    %12 = vector.shape_cast %10 : vector<24x1xi1> to vector<24x1xi1>
    %13 = vector.broadcast %12 : vector<24x1xi1> to vector<24x128xi1>
    %14 = vector.broadcast %cst_5 : f32 to vector<24x128xf32>
    %15 = arith.select %13, %11, %14 : vector<24x128xi1>, vector<24x128xf32>
    %16 = vector.extract_strided_slice %5 {offsets = [0, 128], sizes = [24, 128], strides = [1, 1]} : vector<24x640xf32> to vector<24x128xf32>
    %c1_i32 = arith.constant 1 : i32
    %17 = vector.broadcast %c1_i32 : i32 to vector<24x1xi32>
    %18 = arith.cmpi eq, %8, %17 : vector<24x1xi32>
    %cst_6 = arith.constant 0.000000e+00 : f32
    %19 = vector.shape_cast %18 : vector<24x1xi1> to vector<24x1xi1>
    %20 = vector.broadcast %19 : vector<24x1xi1> to vector<24x128xi1>
    %21 = vector.broadcast %cst_6 : f32 to vector<24x128xf32>
    %22 = arith.select %20, %16, %21 : vector<24x128xi1>, vector<24x128xf32>
    %23 = arith.addf %15, %22 : vector<24x128xf32>
    %24 = vector.extract_strided_slice %5 {offsets = [0, 256], sizes = [24, 128], strides = [1, 1]} : vector<24x640xf32> to vector<24x128xf32>
    %c2_i32 = arith.constant 2 : i32
    %25 = vector.broadcast %c2_i32 : i32 to vector<24x1xi32>
    %26 = arith.cmpi eq, %8, %25 : vector<24x1xi32>
    %cst_7 = arith.constant 0.000000e+00 : f32
    %27 = vector.shape_cast %26 : vector<24x1xi1> to vector<24x1xi1>
    %28 = vector.broadcast %27 : vector<24x1xi1> to vector<24x128xi1>
    %29 = vector.broadcast %cst_7 : f32 to vector<24x128xf32>
    %30 = arith.select %28, %24, %29 : vector<24x128xi1>, vector<24x128xf32>
    %31 = arith.addf %23, %30 : vector<24x128xf32>
    %32 = vector.extract_strided_slice %5 {offsets = [0, 384], sizes = [24, 128], strides = [1, 1]} : vector<24x640xf32> to vector<24x128xf32>
    %c3_i32 = arith.constant 3 : i32
    %33 = vector.broadcast %c3_i32 : i32 to vector<24x1xi32>
    %34 = arith.cmpi eq, %8, %33 : vector<24x1xi32>
    %cst_8 = arith.constant 0.000000e+00 : f32
    %35 = vector.shape_cast %34 : vector<24x1xi1> to vector<24x1xi1>
    %36 = vector.broadcast %35 : vector<24x1xi1> to vector<24x128xi1>
    %37 = vector.broadcast %cst_8 : f32 to vector<24x128xf32>
    %38 = arith.select %36, %32, %37 : vector<24x128xi1>, vector<24x128xf32>
    %39 = arith.addf %31, %38 : vector<24x128xf32>
    %c0_9 = arith.constant 0 : index
    %c0_10 = arith.constant 0 : index
    %40 = vector.load %arg4[%c0_9, %c0_10] : memref<24x128xf32, #tpu.memory_space<vmem>>, vector<24x128xf32>
    tpu.vector_store %arg4[%c0_9, %c0_10], %39 {strides = array<i32>} : memref<24x128xf32, #tpu.memory_space<vmem>>, vector<24x128xf32>,
    return
  }
  func.func @transform_0(%arg0: i32) -> (i32, i32) {
    %c0_i32 = arith.constant 0 : i32
    %c0_i32_0 = arith.constant 0 : i32
    return %arg0, %c0_i32 : i32, i32
  }
  func.func @transform_1(%arg0: i32) -> (i32, i32) {
    %c0_i32 = arith.constant 0 : i32
    %c0_i32_0 = arith.constant 0 : i32
    %c0_i32_1 = arith.constant 0 : i32
    return %c0_i32, %c0_i32_0 : i32, i32
  }
  func.func @transform_2(%arg0: i32) -> (i32, i32) {
    %c0_i32 = arith.constant 0 : i32
    %c0_i32_0 = arith.constant 0 : i32
    %c0_i32_1 = arith.constant 0 : i32
    return %c0_i32, %c0_i32_0 : i32, i32
  }
  func.func @transform_3(%arg0: i32) -> (i32, i32) {
    %c0_i32 = arith.constant 0 : i32
    %c0_i32_0 = arith.constant 0 : i32
    return %arg0, %c0_i32 : i32, i32
  }
}

</mosaic_0001>

<bundles_post_ra>
// kernel: moe_forward.1
= control target key start
LH: loop header
LB: loop body
LE: loop exit
PB: predicated region body
PF: predicated region fallthrough
CT: control target
= control target key end

     0   :  { %v452_v3 = vmov 0.0   ;;  %vm64_vm0 = vcmask 261120   ;;  %v453_v24 = vmov 0.0|0.0   ;;  %vm454_vm1 = vmmov 0   ;;  %s577_s1 = inlined_call_operand.vmem [shape: f32[32,640], index: 1, kind: input, shape index: {}]   ;;  %s578_s0 = inlined_call_operand.vmem [shape: f32[24,32], index: 0, kind: input, shape index: {}]   ;;  %s579_s2 = inlined_call_operand.vmem [shape: f32[1,640], index: 2, kind: input, shape index: {}]   ;;  %s580_s3 = inlined_call_operand.vmem [shape: f32[24,128], index: 3, kind: output, shape index: {}]  }
   0x1   :  { %v18_v0 = vld [vmem:[%s577_s1 + $0x8] sm:$0xff]  ;;  %v23_v1 = vld [vmem:[%s577_s1 + $0x30] sm:$0xff]  ;;  %v17_v2 = vld [vmem:[%s577_s1] sm:$0xff]  ;;  %138 = vmatprep.mubr.f32.mxu0 %v452_v3  ;;  %150 = vmatprep.mubr.f32.mxu1 %v452_v3  ;;  %v39_v35 = vlaneseq }
   0x2   :  { %v423_v4 = vpack.c.bf16 %v23_v1, %v18_v0  ;;  %v22_v5 = vld [vmem:[%s577_s1 + $0x28] sm:$0xff]  ;;  %v28_v6 = vld [vmem:[%s577_s1 + $0x58] sm:$0xff]  ;;  %v33_v7 = vld [vmem:[%s577_s1 + $0x80] sm:$0xff] }
   0x3   :  { %v425_v8 = vpack.c.bf16 %v22_v5, %v17_v2  ;;  %v427_v9 = vpack.c.bf16 %v33_v7, %v28_v6  ;;  %v27_v10 = vld [vmem:[%s577_s1 + $0x50] sm:$0xff]  ;;  %v32_v11 = vld [vmem:[%s577_s1 + $0x78] sm:$0xff]  ;;  %v21_v13 = vld [vmem:[%s577_s1 + $0x20] sm:$0xff]  ;;  %v40_v36 = vshrl.u32 %v39_v35, 7 }
   0x4   :  { %424 = vmatprep.subr.bf16.mxu0 %v423_v4  ;;  %445 = vmatprep.subr.bf16.mxu1 %v423_v4  ;;  %v429_v12 = vpack.c.bf16 %v32_v11, %v27_v10  ;;  %v26_v14 = vld [vmem:[%s577_s1 + $0x48] sm:$0xff]  ;;  %v20_v15 = vld [vmem:[%s577_s1 + $0x18] sm:$0xff]  ;;  %v25_v16 = vld [vmem:[%s577_s1 + $0x40] sm:$0xff] }
   0x5   :  { %426 = vmatpush1.bf16.msra.mxu0 %v425_v8  ;;  %447 = vmatpush1.bf16.msra.mxu1 %v425_v8  ;;  %v431_v17 = vpack.c.bf16 %v25_v16, %v20_v15  ;;  %v19_v18 = vld [vmem:[%s577_s1 + $0x10] sm:$0xff]  ;;  %v24_v19 = vld [vmem:[%s577_s1 + $0x38] sm:$0xff]  ;;  %v30_v20 = vld [vmem:[%s577_s1 + $0x68] sm:$0xff]  ;;  %v440_v23 = vpack.c.bf16 %v26_v14, %v21_v13  ;;  %v57_v40 = vsub.s32 4, %v40_v36  ;;  %v41_v61 = vsub.s32 0, %v40_v36 }
   0x6   :  { %428 = vmatprep.subr.bf16.mxu0 %v427_v9  ;;  %446 = vmatprep.subr.bf16.mxu1 %v427_v9  ;;  %v35_v21 = vld [vmem:[%s577_s1 + $0x90] sm:$0xff]  ;;  %v14_v22 = vld [vmem:[%s578_s0] sm:$0xff]  ;;  %v36_v26 = vld [vmem:[%s577_s1 + $0x98] sm:$0xff]  ;;  %v433_v27 = vpack.c.bf16 %v24_v19, %v19_v18  ;;  %v45_v62 = vsub.s32 1, %v40_v36  ;;  %v49_v63 = vsub.s32 2, %v40_v36  ;;  %v53_v0 = vsub.s32 3, %v40_v36 }
   0x7   :  { %v31_v25 = vld [vmem:[%s577_s1 + $0x70] sm:$0xff]  ;;  %v435_v29 = vpack.c.bf16 %v35_v21, %v30_v20  ;;  %v29_v30 = vld [vmem:[%s577_s1 + $0x60] sm:$0xff]  ;;  %v34_v31 = vld [vmem:[%s577_s1 + $0x88] sm:$0xff] }
   0x8   :  { %v16_v28 = vld [vmem:[%s578_s0 + $0x10] sm:$0xff]  ;;  %v15_v32 = vld [vmem:[%s578_s0 + $0x8] sm:$0xff]  ;;  %v443_v33 = vpack.c.bf16 %v36_v26, %v31_v25  ;;  %v437_v34 = vpack.c.bf16 %v34_v31, %v29_v30  ;;  %v37_v42 = vld [vmem:[%s579_s2] sm:$0x1f] }
   0x9   :  { %430 = vmatpush1.bf16.msra.mxu0 %v429_v12  ;;  %448 = vmatpush1.bf16.msra.mxu1 %v429_v12  ;;  %v58_v45 = vrot.slane %v37_v42, %v57_v40  ;;  %v42_v1 = vrot.slane %v37_v42, %v41_v61  ;;  %v46_v2 = vrot.slane %v37_v42, %v45_v62 }
   0xa   :  { %439 = vmatprep.subr.bf16.mxu0 %v453_v24  ;;  %432 = vmatprep.subr.bf16.mxu1 %v431_v17  ;;  %v54_v4 = vrot.slane %v37_v42, %v53_v0 }
   0xc   :  { %390 = vmatmul.mubr.msk.f32.vlgmr.msra.gmra.mrb[0].mxu0 %vm64_vm0, %v14_v22  ;;  %392 = vmatmul.mubr.msk.f32.vlgmr.msra.gmra.mrb[0].mxu1 %vm64_vm0, %v16_v28 }
   0xd   :  { %441 = vmatpush3.bf16.msra.mxu0 %v440_v23  ;;  %144 = vmatprep.mubr.f32.mxu0 %v452_v3 }
   0xe   :  { %442 = vmatprep.subr.bf16.mxu0 %v453_v24  ;;  %434 = vmatpush1.bf16.msra.mxu1 %v433_v27 }
   0xf   :  { %436 = vmatprep.subr.bf16.mxu1 %v435_v29  ;;  %221 = vmatprep.mubr.f32.mxu1 %v452_v3 }
  0x10   :  { %391 = vmatmul.mubr.msk.f32.gmra.mrb[2].mxu0 %vm64_vm0, %v15_v32 }
  0x11   :  { %444 = vmatpush3.bf16.msra.mxu0 %v443_v33  ;;  %414 = vmatprep.mubr.msk.f32.mxu0 %vm454_vm1, %v452_v3 }
  0x12   :  { %438 = vmatpush1.bf16.msra.mxu1 %v437_v34 }
  0x14   :  { %415 = vmatmul.mubr.msk.f32.vlgmr.msra.gmra.mrb[4].mxu0 %vm64_vm0, %v14_v22 }
  0x15   :  { %417 = vmatprep.mubr.msk.f32.mxu0 %vm454_vm1, %v452_v3  ;;  %393 = vmatmul.mubr.msk.f32.vlgmr.msra.gmra.mrb[2].mxu1 %vm64_vm0, %v14_v22 }
  0x16   :  { %227 = vmatprep.mubr.f32.mxu1 %v452_v3 }
  0x18   :  { %418 = vmatmul.mubr.msk.f32.gmra.mrb[6].mxu0 %vm64_vm0, %v15_v32 }
  0x19   :  { %420 = vmatprep.mubr.msk.f32.mxu0 %vm454_vm1, %v452_v3  ;;  %394 = vmatmul.mubr.msk.f32.gmra.mrb[4].mxu1 %vm64_vm0, %v15_v32 }
  0x1a   :  { %233 = vmatprep.mubr.f32.mxu1 %v452_v3  ;;  %v50_v3 = vrot.slane %v37_v42, %v49_v63 }
  0x1c   :  { %421 = vmatmul.mubr.msk.f32.gmra.mrb[8].mxu0 %vm64_vm0, %v16_v28 }
  0x1d   :  { %395 = vmatmul.mubr.msk.f32.gmra.mrb[6].mxu1 %vm64_vm0, %v16_v28 }
  0xdf   :  { %v140_v37 = vpop.f32.mrb[0].mxu0  ;;  %v562_v38 = vpop.f32.mrb[0].mxu1 }
  0xe0   :  { %v142_v39 = vpop.f32.mrb[1].mxu0  ;;  %v154_v41 = vpop.f32.mrb[1].mxu1  ;;  %v141_v5 = vadd.f32 %v140_v37, %v42_v1  ;;  %v153_v25 = vadd.f32 %v562_v38, %v42_v1 }
  0xe1   :  { %v143_v6 = vadd.f32 %v142_v39, %v46_v2  ;;  %v155_v26 = vadd.f32 %v154_v41, %v46_v2 }
  0xe3   :  { %v146_v43 = vpop.f32.mrb[2].mxu0 }
  0xe4   :  { %v148_v44 = vpop.f32.mrb[3].mxu0  ;;  %v147_v13 = vadd.f32 %v146_v43, %v42_v1 }
  0xe5   :  { %v149_v14 = vadd.f32 %v148_v44, %v46_v2 }
  0xe7   :  { %v306_v46 = vpop.f32.mrb[4].mxu0 }
  0xe8   :  { %v416_v47 = vpop.f32.mrb[5].mxu0  ;;  %v307_v48 = vadd.f32 %v306_v46, %v58_v45  ;;  %v223_v49 = vpop.f32.mrb[2].mxu1 }
  0xe9   :  { %v225_v50 = vpop.f32.mrb[3].mxu1  ;;  %v224_v7 = vadd.f32 %v223_v49, %v50_v3 }
  0xea   :  { %320 = vmax.index.xlane.f32.xlu0 %v307_v48  ;;  %v226_v9 = vadd.f32 %v225_v50, %v54_v4 }
  0xeb   :  { %v311_v51 = vpop.f32.mrb[6].mxu0 }
  0xec   :  { %v312_v52 = vadd.f32 %v311_v51, %v58_v45  ;;  %v419_v53 = vpop.f32.mrb[7].mxu0  ;;  %v229_v57 = vpop.f32.mrb[4].mxu1 }
  0xed   :  { %v231_v58 = vpop.f32.mrb[5].mxu1  ;;  %v230_v16 = vadd.f32 %v229_v57, %v50_v3 }
  0xee   :  { %322 = vmax.index.xlane.f32.xlu0 %v312_v52  ;;  %v232_v20 = vadd.f32 %v231_v58, %v54_v4 }
  0xef   :  { %v316_v54 = vpop.f32.mrb[8].mxu0 }
  0xf0   :  { %v422_v55 = vpop.f32.mrb[9].mxu0  ;;  %v317_v56 = vadd.f32 %v316_v54, %v58_v45  ;;  %v235_v59 = vpop.f32.mrb[6].mxu1 }
  0xf1   :  { %v237_v60 = vpop.f32.mrb[7].mxu1  ;;  %v236_v28 = vadd.f32 %v235_v59, %v50_v3 }
  0xf2   :  { %324 = vmax.index.xlane.f32.xlu1 %v317_v56  ;;  %v238_v32 = vadd.f32 %v237_v60, %v54_v4 }
 0x177   :  { %v321_v8 = vpop.xlane.xlu0 %320 }
 0x178   :  { %vm326_vm2 = vcmp.eq.s32.totalorder %v321_v8, 0  ;;  %vm338_vm3 = vcmp.eq.s32.totalorder %v321_v8, 1  ;;  %vm353_vm4 = vcmp.eq.s32.totalorder %v321_v8, 2  ;;  %vm368_vm5 = vcmp.eq.s32.totalorder %v321_v8, 3 }
 0x179   :  { %v335_v10 = vsel %vm326_vm2, %v141_v5, 0.0  ;;  %v347_v11 = vsel %vm338_vm3, %v143_v6, 0.0  ;;  %v362_v15 = vsel %vm353_vm4, %v224_v7, 0.0  ;;  %v377_v19 = vsel %vm368_vm5, %v226_v9, 0.0 }
 0x17a   :  { %v350_v12 = vadd.f32 %v347_v11, %v335_v10 }
 0x17b   :  { %v323_v17 = vpop.xlane.xlu0 %322 }
 0x17c   :  { %v365_v18 = vadd.f32 %v362_v15, %v350_v12  ;;  %vm327_vm6 = vcmp.eq.s32.totalorder %v323_v17, 0  ;;  %vm339_vm7 = vcmp.eq.s32.totalorder %v323_v17, 1  ;;  %vm354_vm8 = vcmp.eq.s32.totalorder %v323_v17, 2 }
 0x17d   :  { %v336_v21 = vsel %vm327_vm6, %v147_v13, 0.0  ;;  %v348_v22 = vsel %vm339_vm7, %v149_v14, 0.0  ;;  %vm369_vm9 = vcmp.eq.s32.totalorder %v323_v17, 3  ;;  %v363_v27 = vsel %vm354_vm8, %v230_v16, 0.0 }
 0x17e   :  { %v380_v23 = vadd.f32 %v377_v19, %v365_v18  ;;  %v351_v24 = vadd.f32 %v348_v22, %v336_v21  ;;  %v378_v31 = vsel %vm369_vm9, %v232_v20, 0.0 }
 0x17f   :  { %v325_v29 = vpop.xlane.xlu1 %324 }
 0x180   :  { %383 = vst [vmem:[%s580_s3] sm:$0xff] %v380_v23  ;;  %v366_v30 = vadd.f32 %v363_v27, %v351_v24  ;;  %vm328_vm10 = vcmp.eq.s32.totalorder %v325_v29, 0  ;;  %vm340_vm11 = vcmp.eq.s32.totalorder %v325_v29, 1  ;;  %vm355_vm12 = vcmp.eq.s32.totalorder %v325_v29, 2 }
 0x181   :  { %v337_v33 = vsel %vm328_vm10, %v153_v25, 0.0  ;;  %v349_v34 = vsel %vm340_vm11, %v155_v26, 0.0  ;;  %vm370_vm13 = vcmp.eq.s32.totalorder %v325_v29, 3  ;;  %v364_v37 = vsel %vm355_vm12, %v236_v28, 0.0 }
 0x182   :  { %v381_v35 = vadd.f32 %v378_v31, %v366_v30  ;;  %v352_v36 = vadd.f32 %v349_v34, %v337_v33  ;;  %v379_v39 = vsel %vm370_vm13, %v238_v32, 0.0 }
 0x184   :  { %384 = vst [vmem:[%s580_s3 + $0x8] sm:$0xff] %v381_v35  ;;  %v367_v38 = vadd.f32 %v364_v37, %v352_v36 }
 0x186   :  { %v382_v40 = vadd.f32 %v379_v39, %v367_v38 }
 0x188   :  { %385 = vst [vmem:[%s580_s3 + $0x10] sm:$0xff] %v382_v40 }

</bundles_post_ra>
